<compile_context>
chip_gen: v5e
topology: v5e:2x2
jax: 0.10.0
libtpu: 0.0.40
codegen_flags: <defaults>
</compile_context>

<pallas_src>
import functools

import jax
import jax.numpy as jnp
from jax.experimental import pallas as pl
from jax.experimental.pallas import tpu as pltpu


def _round_up(x: int, m: int) -> int:
    return ((x + m - 1) // m) * m


def mlp_kernel(x_ref, w1_ref, b1_ref, w2_ref, b2_ref, o_ref):
    # Layer 1: bf16 MXU matmul with f32 accumulation; bias add + ReLU in f32.
    h = jnp.dot(x_ref[...], w1_ref[...], preferred_element_type=jnp.float32)
    h = jnp.maximum(h + b1_ref[...], 0.0)
    # Layer 2: cast activations to bf16 for the MXU; accumulate / bias-add in f32.
    out = jnp.dot(h.astype(jnp.bfloat16), w2_ref[...],
                  preferred_element_type=jnp.float32)
    o_ref[...] = (out + b2_ref[...]).astype(o_ref.dtype)


@functools.partial(jax.jit, static_argnames=("tile_b",))
def mnist_model_forward(x_nchw, w1_t, b1, w2_t, b2, *, tile_b=256):
    """Fused 2-layer MLP forward.

    x_nchw: (B, C, H, W) float32
    w1_t:   (D, Hid) float32    b1: (1, Hid) float32
    w2_t:   (Hid, O) float32    b2: (1, O)   float32
    Returns (B, O) float32 logits.
    """
    B = x_nchw.shape[0]
    x2d = x_nchw.reshape(B, -1)                      # flatten == xbtch.view(B, -1)
    D = x2d.shape[1]
    Hid = w1_t.shape[1]
    O = w2_t.shape[1]

    # --- lane-dense output head: pad O -> multiple of 128 with zero columns ---
    O_pad = _round_up(max(O, 128), 128)
    w2_p = jnp.zeros((Hid, O_pad), jnp.float32).at[:, :O].set(w2_t)
    b2_p = jnp.zeros((1, O_pad), jnp.float32).at[:, :O].set(b2)

    # --- batch tiling: multiple-of-8 sublane tiles, pad B up to a tile ---
    # TILE_B: 256 matches the 2x256^2 MXU on v6e/v7x; pass tile_b=128 on v5e.
    tile_b = min(tile_b, _round_up(B, 8))
    B_pad = _round_up(B, tile_b)
    if B_pad != B:
        x2d = jnp.pad(x2d, ((0, B_pad - B), (0, 0)))

    # --- bf16 MXU inputs (halves HBM traffic for x, the only batch-scaled tensor)
    x_bf = x2d.astype(jnp.bfloat16)
    w1_bf = w1_t.astype(jnp.bfloat16)
    w2_bf = w2_p.astype(jnp.bfloat16)

    grid = (B_pad // tile_b,)

    out = pl.pallas_call(
        mlp_kernel,
        out_shape=jax.ShapeDtypeStruct((B_pad, O_pad), jnp.float32),
        grid=grid,
        in_specs=[
            pl.BlockSpec((tile_b, D), lambda i: (i, 0)),   # x: streamed per tile
            pl.BlockSpec((D, Hid), lambda i: (0, 0)),      # W1: VMEM-resident
            pl.BlockSpec((1, Hid), lambda i: (0, 0)),      # b1: VMEM-resident
            pl.BlockSpec((Hid, O_pad), lambda i: (0, 0)),  # W2: VMEM-resident
            pl.BlockSpec((1, O_pad), lambda i: (0, 0)),    # b2: VMEM-resident
        ],
        out_specs=pl.BlockSpec((tile_b, O_pad), lambda i: (i, 0)),
        compiler_params=pltpu.CompilerParams(
            dimension_semantics=("parallel",)),
    )(x_bf, w1_bf, b1, w2_bf, b2_p)

    return out[:B, :O]


def init_linear(key, in_features, out_features):
    """Deterministic PyTorch-style nn.Linear init:
       U(-1/sqrt(fan_in), 1/sqrt(fan_in)) for weight (out, in) and bias."""
    kw, kb = jax.random.split(key)
    bound = 1.0 / jnp.sqrt(jnp.float32(in_features))
    w = jax.random.uniform(kw, (out_features, in_features),
                           minval=-bound, maxval=bound, dtype=jnp.float32)
    b = jax.random.uniform(kb, (out_features,),
                           minval=-bound, maxval=bound, dtype=jnp.float32)
    return w, b


if __name__ == "__main__":
    # Small shapes consistent with the module: 16x16 single-channel "images",
    # input_neurons = 1*16*16 = 256, hidden_neurons = 128, output = 10 classes.
    B, C, H, W = 8, 1, 16, 16
    input_neurons = C * H * W
    hidden_neurons = 128
    output = 10

    key = jax.random.PRNGKey(0)
    kx, k1, k2 = jax.random.split(key, 3)

    x = jax.random.normal(kx, (B, C, H, W), dtype=jnp.float32)  # NCHW

    # Parameters in PyTorch layout (out, in), then transpose for the kernel.
    w1, b1 = init_linear(k1, input_neurons, hidden_neurons)
    w2, b2 = init_linear(k2, hidden_neurons, output)
    w1_t = w1.T                              # (D, Hid)
    w2_t = w2.T                              # (Hid, O)
    b1_2d = b1.reshape(1, hidden_neurons)
    b2_2d = b2.reshape(1, output)

    out = mnist_model_forward(x, w1_t, b1_2d, w2_t, b2_2d)
    out = jax.block_until_ready(out)
    assert out.shape == (B, output)

    # Reference 1: pure-JAX forward with the SAME bf16 matmul precision as the
    # kernel (bf16 MXU inputs, f32 accumulation) -> should match tightly.
    x2d = x.reshape(B, -1)
    h_ref = jnp.maximum(
        jnp.dot(x2d.astype(jnp.bfloat16), w1_t.astype(jnp.bfloat16),
                preferred_element_type=jnp.float32) + b1_2d, 0.0)
    ref_bf16 = jnp.dot(h_ref.astype(jnp.bfloat16), w2_t.astype(jnp.bfloat16),
                       preferred_element_type=jnp.float32) + b2_2d
    assert jnp.allclose(out, ref_bf16, atol=2e-2, rtol=2e-2), \
        "mismatch vs bf16-precision reference"

    # Reference 2: full-f32 PyTorch-equivalent forward (loose tolerance: the
    # kernel intentionally uses bf16 MXU inputs).
    ref_f32 = jnp.maximum(x2d @ w1.T + b1, 0.0) @ w2.T + b2
    assert jnp.allclose(out, ref_f32, atol=1e-1, rtol=1e-1), \
        "mismatch vs f32 reference"

    print("KERNEL_OK")
</pallas_src>

<mosaic_0001>
module attributes {stable_mosaic.version = 11 : i64} {
  func.func @mlp_kernel(%arg0: i32, %arg1: memref<8x256xbf16, #tpu.memory_space<vmem>>, %arg2: memref<256x128xbf16, #tpu.memory_space<vmem>>, %arg3: memref<1x128xf32, #tpu.memory_space<vmem>>, %arg4: memref<128x128xbf16, #tpu.memory_space<vmem>>, %arg5: memref<1x128xf32, #tpu.memory_space<vmem>>, %arg6: memref<8x128xf32, #tpu.memory_space<vmem>>) attributes {dimension_semantics = [#tpu.dimension_semantics<parallel>], iteration_bounds = array<i64: 1>, scalar_prefetch = 0 : i64, scratch_operands = 0 : i64, tpu.core_type = #tpu.core_type<tc>, window_params = [{transform_indices = @transform_0, window_bounds = array<i64: 8, 256>}, {pipeline_mode = #tpu.pipeline_mode<synchronous>, transform_indices = @transform_1, window_bounds = array<i64: 256, 128>}, {pipeline_mode = #tpu.pipeline_mode<synchronous>, transform_indices = @transform_2, window_bounds = array<i64: 1, 128>}, {pipeline_mode = #tpu.pipeline_mode<synchronous>, transform_indices = @transform_3, window_bounds = array<i64: 128, 128>}, {pipeline_mode = #tpu.pipeline_mode<synchronous>, transform_indices = @transform_4, window_bounds = array<i64: 1, 128>}, {transform_indices = @transform_5, window_bounds = array<i64: 8, 128>}]} {
    %c0 = arith.constant 0 : index
    %c0_0 = arith.constant 0 : index
    %0 = vector.load %arg1[%c0, %c0_0] : memref<8x256xbf16, #tpu.memory_space<vmem>>, vector<8x256xbf16>
    %c0_1 = arith.constant 0 : index
    %c0_2 = arith.constant 0 : index
    %1 = vector.load %arg2[%c0_1, %c0_2] : memref<256x128xbf16, #tpu.memory_space<vmem>>, vector<256x128xbf16>
    %cst = arith.constant dense<0.000000e+00> : vector<8x128xf32>
    %2 = tpu.matmul %0, %1, %cst {dimension_numbers = #tpu.dot_dimension_numbers<[1], [0], [0], [1], [0, 0, 1, 1], [], []>} : vector<8x256xbf16>, vector<256x128xbf16>, vector<8x128xf32> -> vector<8x128xf32>
    %c0_3 = arith.constant 0 : index
    %c0_4 = arith.constant 0 : index
    %3 = vector.load %arg3[%c0_3, %c0_4] : memref<1x128xf32, #tpu.memory_space<vmem>>, vector<1x128xf32>
    %4 = vector.broadcast %3 : vector<1x128xf32> to vector<8x128xf32>
    %5 = arith.addf %2, %4 : vector<8x128xf32>
    %cst_5 = arith.constant 0.000000e+00 : f32
    %6 = vector.broadcast %cst_5 : f32 to vector<8x128xf32>
    %7 = arith.maximumf %5, %6 : vector<8x128xf32>
    %8 = arith.truncf %7 : vector<8x128xf32> to vector<8x128xbf16>
    %c0_6 = arith.constant 0 : index
    %c0_7 = arith.constant 0 : index
    %9 = vector.load %arg4[%c0_6, %c0_7] : memref<128x128xbf16, #tpu.memory_space<vmem>>, vector<128x128xbf16>
    %cst_8 = arith.constant dense<0.000000e+00> : vector<8x128xf32>
    %10 = tpu.matmul %8, %9, %cst_8 {dimension_numbers = #tpu.dot_dimension_numbers<[1], [0], [0], [1], [0, 0, 1, 1], [], []>} : vector<8x128xbf16>, vector<128x128xbf16>, vector<8x128xf32> -> vector<8x128xf32>
    %c0_9 = arith.constant 0 : index
    %c0_10 = arith.constant 0 : index
    %11 = vector.load %arg5[%c0_9, %c0_10] : memref<1x128xf32, #tpu.memory_space<vmem>>, vector<1x128xf32>
    %12 = vector.broadcast %11 : vector<1x128xf32> to vector<8x128xf32>
    %13 = arith.addf %10, %12 : vector<8x128xf32>
    %c0_11 = arith.constant 0 : index
    %c0_12 = arith.constant 0 : index
    %14 = vector.load %arg6[%c0_11, %c0_12] : memref<8x128xf32, #tpu.memory_space<vmem>>, vector<8x128xf32>
    tpu.vector_store %arg6[%c0_11, %c0_12], %13 {strides = array<i32>} : memref<8x128xf32, #tpu.memory_space<vmem>>, vector<8x128xf32>,
    return
  }
  func.func @transform_0(%arg0: i32) -> (i32, i32) {
    %c0_i32 = arith.constant 0 : i32
    %c0_i32_0 = arith.constant 0 : i32
    return %arg0, %c0_i32 : i32, i32
  }
  func.func @transform_1(%arg0: i32) -> (i32, i32) {
    %c0_i32 = arith.constant 0 : i32
    %c0_i32_0 = arith.constant 0 : i32
    %c0_i32_1 = arith.constant 0 : i32
    return %c0_i32, %c0_i32_0 : i32, i32
  }
  func.func @transform_2(%arg0: i32) -> (i32, i32) {
    %c0_i32 = arith.constant 0 : i32
    %c0_i32_0 = arith.constant 0 : i32
    %c0_i32_1 = arith.constant 0 : i32
    return %c0_i32, %c0_i32_0 : i32, i32
  }
  func.func @transform_3(%arg0: i32) -> (i32, i32) {
    %c0_i32 = arith.constant 0 : i32
    %c0_i32_0 = arith.constant 0 : i32
    %c0_i32_1 = arith.constant 0 : i32
    return %c0_i32, %c0_i32_0 : i32, i32
  }
  func.func @transform_4(%arg0: i32) -> (i32, i32) {
    %c0_i32 = arith.constant 0 : i32
    %c0_i32_0 = arith.constant 0 : i32
    %c0_i32_1 = arith.constant 0 : i32
    return %c0_i32, %c0_i32_0 : i32, i32
  }
  func.func @transform_5(%arg0: i32) -> (i32, i32) {
    %c0_i32 = arith.constant 0 : i32
    %c0_i32_0 = arith.constant 0 : i32
    return %arg0, %c0_i32 : i32, i32
  }
}

</mosaic_0001>

<bundles_post_ra>
// kernel: mnist_model_forward.1
= control target key start
LH: loop header
LB: loop body
LE: loop exit
PB: predicated region body
PF: predicated region fallthrough
CT: control target
= control target key end

     0   :  { %s551_s0 = inlined_call_operand.vmem [shape: bf16[8,256], index: 0, kind: input, shape index: {}]   ;;  %s552_s1 = inlined_call_operand.vmem [shape: bf16[256,128], index: 1, kind: input, shape index: {}]   ;;  %s553_s2 = inlined_call_operand.vmem [shape: f32[1,128], index: 2, kind: input, shape index: {}]   ;;  %s554_s3 = inlined_call_operand.vmem [shape: bf16[128,128], index: 3, kind: input, shape index: {}]   ;;  %s555_s4 = inlined_call_operand.vmem [shape: f32[1,128], index: 4, kind: input, shape index: {}]   ;;  %s556_s5 = inlined_call_operand.hbm [shape: f32[8,128], index: 5, kind: output, shape index: {}]  }
   0x1   :  { %v390_v0 = vld [vmem:[%s552_s1 + $0x38] sm:$0xff]  ;;  %v389_v2 = vld [vmem:[%s552_s1 + $0x30] sm:$0xff]  ;;  %v388_v5 = vld [vmem:[%s552_s1 + $0x28] sm:$0xff] }
   0x2   :  { %v398_v1 = vld [vmem:[%s552_s1 + $0x78] sm:$0xff]  ;;  %161 = vmatpush.bf16.msra.mxu0 %v390_v0  ;;  %v397_v3 = vld [vmem:[%s552_s1 + $0x70] sm:$0xff]  ;;  %v396_v6 = vld [vmem:[%s552_s1 + $0x68] sm:$0xff] }
   0x3   :  { %174 = vmatpush.bf16.msra.mxu1 %v398_v1  ;;  %v406_v4 = vld [vmem:[%s554_s3 + $0x38] sm:$0xff]  ;;  %v405_v7 = vld [vmem:[%s554_s3 + $0x30] sm:$0xff] }
   0x4   :  { %257 = vmatpush.bf16.msra.mxu2 %v406_v4 }
   0x6   :  { %162 = vmatpush.bf16.msra.mxu0 %v389_v2 }
   0x7   :  { %175 = vmatpush.bf16.msra.mxu1 %v397_v3 }
   0x8   :  { %10 = vsyncpa [#allocation3], 0  ;;  %v387_v8 = vld [vmem:[%s552_s1 + $0x20] sm:$0xff]  ;;  %258 = vmatpush.bf16.msra.mxu2 %v405_v7  ;;  %v404_v10 = vld [vmem:[%s554_s3 + $0x28] sm:$0xff]  ;;  %s436_s20 = smov [#allocation2]   ;;  %s278_s23 = sshll.u32 %s556_s5, 4  ;;  %s279_s23 = int_to_ptr.hbm [resolvable:$true] %s278_s23 }
   0x9   :  { %v395_v9 = vld [vmem:[%s552_s1 + $0x60] sm:$0xff]  ;;  %v386_v11 = vld [vmem:[%s552_s1 + $0x18] sm:$0xff]  ;;  %v385_v14 = vld [vmem:[%s552_s1 + $0x10] sm:$0xff] }
   0xa   :  { %163 = vmatpush.bf16.msra.mxu0 %v388_v5  ;;  %v394_v12 = vld [vmem:[%s552_s1 + $0x58] sm:$0xff]  ;;  %v403_v13 = vld [vmem:[%s554_s3 + $0x20] sm:$0xff]  ;;  %v393_v15 = vld [vmem:[%s552_s1 + $0x50] sm:$0xff] }
   0xb   :  { %176 = vmatpush.bf16.msra.mxu1 %v396_v6  ;;  %v402_v16 = vld [vmem:[%s554_s3 + $0x18] sm:$0xff]  ;;  %v384_v17 = vld [vmem:[%s552_s1 + $0x8] sm:$0xff]  ;;  %v21_v19 = vld [vmem:[%s551_s0] sm:$0xff] }
   0xc   :  { %259 = vmatpush.bf16.msra.mxu2 %v404_v10  ;;  %v392_v18 = vld [vmem:[%s552_s1 + $0x48] sm:$0xff]  ;;  %v401_v20 = vld [vmem:[%s554_s3 + $0x10] sm:$0xff]  ;;  %v59_v21 = vunpack.c.l.b16 %v21_v19  ;;  %v60_v22 = vunpack.c.h.b16 %v21_v19  ;;  %v383_v23 = vld [vmem:[%s552_s1] sm:$0xff] }
   0xd   :  { %v391_v24 = vld [vmem:[%s552_s1 + $0x40] sm:$0xff]  ;;  %v400_v27 = vld [vmem:[%s554_s3 + $0x8] sm:$0xff] }
   0xe   :  { %164 = vmatpush.bf16.msra.mxu0 %v387_v8  ;;  %v61_v25 = vpack.c.b16 %v59_v21, %v59_v21  ;;  %v62_v26 = vpack.c.b16 %v60_v22, %v60_v22  ;;  %v399_v28 = vld [vmem:[%s554_s3] sm:$0xff]  ;;  %s276_s3 = sshll.u32 %s436_s20, 4  ;;  %s277_s3 = int_to_ptr.vmem [resolvable:$true] %s276_s3 }
   0xf   :  { %177 = vmatpush.bf16.msra.mxu1 %v395_v9  ;;  %v408_v29 = vld [vmem:[%s553_s2] ss:$0 sm:$0xff] }
  0x10   :  { %260 = vmatpush.bf16.msra.mxu2 %v403_v13  ;;  %v409_v38 = vld [vmem:[%s555_s4] ss:$0 sm:$0xff] }
  0x12   :  { %165 = vmatpush.bf16.msra.mxu0 %v386_v11 }
  0x13   :  { %178 = vmatpush.bf16.msra.mxu1 %v394_v12 }
  0x14   :  { %261 = vmatpush.bf16.msra.mxu2 %v402_v16 }
  0x16   :  { %166 = vmatpush.bf16.msra.mxu0 %v385_v14 }
  0x17   :  { %179 = vmatpush.bf16.msra.mxu1 %v393_v15 }
  0x18   :  { %262 = vmatpush.bf16.msra.mxu2 %v401_v20 }
  0x1a   :  { %167 = vmatpush.bf16.msra.mxu0 %v384_v17 }
  0x1b   :  { %180 = vmatpush.bf16.msra.mxu1 %v392_v18 }
  0x1c   :  { %263 = vmatpush.bf16.msra.mxu2 %v400_v27 }
  0x1e   :  { %168 = vmatpush.bf16.msra.mxu0 %v383_v23 }
  0x1f   :  { %181 = vmatpush.bf16.msra.mxu1 %v391_v24 }
  0x20   :  { %264 = vmatpush.bf16.msra.mxu2 %v399_v28 }
  0x21   :  { %169 = vmatmul.bf16.vlgmr.msra.gmra.mxu0 %v61_v25 }
  0x22   :  { %182 = vmatmul.bf16.vlgmr.msra.gmra.mxu1 %v62_v26 }
  0x9e   :  { %v170_v30 = vpop.f32.mrf.mxu0 }
  0x9f   :  { %v183_v31 = vpop.f32.mrf.mxu1  ;;  %v171_v32 = vadd.f32 %v408_v29, %v170_v30 }
  0xa1   :  { %v184_v33 = vadd.f32 %v183_v31, %v171_v32 }
  0xa3   :  { %v187_v34 = vmax.f32 %v184_v33, 0.0 }
  0xa5   :  { %v188_v35 = vpack.c.bf16 %v187_v34, %v187_v34 }
  0xa6   :  { %v172_v36 = vpop.f32.mrf.mxu0 }
  0xa7   :  { %v185_v37 = vpop.f32.mrf.mxu1  ;;  %265 = vmatmul.bf16.vlgmr.msra.gmra.mxu2 %v188_v35 }
 0x12a   :  { %v266_v39 = vpop.f32.mrf.mxu2 }
 0x12b   :  { %v267_v40 = vadd.f32 %v409_v38, %v266_v39 }
 0x12d   :  { %270 = vst [vmem:[#allocation2] sm:$0xff] %v267_v40 }
 0x12e   :  { %281 = dma.vmem_to_hbm [thread:$0]  %s277_s3, 128, %s279_s23, [#allocation3]  }
 0x132   :  { %v268_v41 = vpop.f32.mrf.mxu2 }
 0x133   :  { %434 = dma.done.wait [#allocation3], 128  }
 0x134   :  { %435 = vsyncadd [#allocation3], 4294967168 }
 0x135   :  { %286 = vsyncpa [#allocation3], 1 }

</bundles_post_ra>
